<compile_context>
chip_gen: v6e
topology: v6e:2x2x1
jax: 0.10.0
libtpu: 0.0.40
codegen_flags: <defaults>
</compile_context>

<pallas_src>
import functools

import jax
import jax.numpy as jnp
from jax.experimental import pallas as pl
from jax.experimental.pallas import tpu as pltpu

_NEG_BIG = -1e30  # exp(_NEG_BIG) == 0 in f32; stands in for masked-out edges.


def _elu(v):
    # min() keeps the dead branch of where() finite (no inf from exp of big +v).
    return jnp.where(v > 0, v, jnp.exp(jnp.minimum(v, 0.0)) - 1.0)


# ------------------------------ Pallas kernel -------------------------------

def _gat_attn_kernel(s_src_ref, s_dst_ref, h_aug_ref, mask_ref, o_ref,
                     *, alpha, nheads, fout, reduce_heads):
    """Masked attention + aggregation for all heads, one query-row tile.

    s_src_ref : (tq, H)        f32   query-side logits (row tile)
    s_dst_ref : (H, N)         f32   key-side logits (resident, pre-transposed)
    h_aug_ref : (H, N, Fout+1) bf16  per-head [h_head | ones] aggregation RHS
    mask_ref  : (tq, N)        int8  adjacency row tile
    o_ref     : (tq, H*Fout) or (tq, Fout)
    """
    tq = o_ref.shape[0]
    valid = mask_ref[...] != 0                                   # (tq, N) bool

    acc = jnp.zeros((tq, fout), jnp.float32) if reduce_heads else None

    for h in range(nheads):                                      # static unroll
        # broadcast-add of precomputed logits: (tq,1) + (1,N) -> (tq,N)
        score = s_src_ref[:, h:h + 1] + s_dst_ref[h:h + 1, :]
        lrelu = jnp.where(score > 0, score, alpha * score)       # LeakyReLU
        # mask folded into the exponent: masked pairs give exp(-BIG) == 0.
        # TODO(synk): no clamp on valid-edge exp overflow (matches reference).
        e = jnp.exp(jnp.where(valid, -lrelu, _NEG_BIG))          # (tq, N) f32

        # aggregation + fused row-sum: RHS is just this head's features plus a
        # ones column (width Fout+1), never the full H*Fout slab.
        agg = jnp.dot(e.astype(jnp.bfloat16), h_aug_ref[h],
                      preferred_element_type=jnp.float32)        # (tq, Fout+1)
        rowsum = agg[:, fout:fout + 1] + 1e-5                    # (tq, 1)
        out_h = _elu(agg[:, :fout] / rowsum)                     # concat=True

        if reduce_heads:
            acc = acc + out_h
        else:
            o_ref[:, h * fout:(h + 1) * fout] = out_h            # in-kernel concat

    if reduce_heads:
        o_ref[...] = acc * (1.0 / nheads)


# --------------------------- per-layer host wrapper --------------------------

def _layer_precompute(x, w_packed, a_src_blk, a_dst_blk, nheads):
    """Hoisted projection + batched attention logits (plain XLA, once/layer)."""
    n = x.shape[0]
    hf = w_packed.shape[1]
    fout = hf // nheads
    h_all = jnp.dot(x, w_packed)                 # (N, H*Fout) f32, one wide matmul
    s_src = jnp.dot(h_all, a_src_blk)            # (N, H)  -- query-side logits
    s_dst_t = jnp.dot(h_all, a_dst_blk).T        # (H, N)  -- key-side, pre-transposed
    # per-head bf16 aggregation RHS [h_head | ones]; ones column fuses the
    # row-sum into the MXU matmul (no cross-lane reduction in the kernel).
    h_heads = h_all.reshape(n, nheads, fout).transpose(1, 0, 2)   # (H, N, Fout)
    ones = jnp.ones((nheads, n, 1), jnp.float32)
    h_aug = jnp.concatenate([h_heads, ones], axis=-1).astype(jnp.bfloat16)
    return s_src, s_dst_t, h_aug


def _pick_row_tile(n):
    # Prefer a real multi-step row grid (pipelined mask DMA; both v7x cores).
    # Tiles are multiples of 32 so the int8 mask block tiling is legal.
    for cand in (512, 256, 128, 64, 32):
        if n > cand and n % cand == 0:
            return cand
    return n


def gat_layer(x, mask_i8, w_packed, a_src_blk, a_dst_blk, *, alpha, nheads,
              reduce_heads=False, row_tile=None):
    """One SpGraphAttentionLayer bank (all heads) as a single pallas_call.

    x         : (N, Fin) f32
    mask_i8   : (N, N) int8, 1 where adj != 0
    w_packed  : (Fin, H*Fout)   per-head W concatenated along columns
    a_src_blk : (H*Fout, H)     block-diagonal source attention vectors
    a_dst_blk : (H*Fout, H)     block-diagonal target attention vectors
    returns   : (N, H*Fout) = [elu(h'_h0) | elu(h'_h1) | ...]      if not reduce
                (N, Fout)   = mean_h elu(h'_h)                     if reduce
    """
    n = x.shape[0]
    hf = w_packed.shape[1]
    fout = hf // nheads
    out_cols = fout if reduce_heads else hf

    # projection + logits hoisted out of the kernel (item 1 & 3 of the review)
    s_src, s_dst_t, h_aug = _layer_precompute(x, w_packed, a_src_blk,
                                              a_dst_blk, nheads)

    tq = _pick_row_tile(n) if row_tile is None else row_tile
    assert n % tq == 0 and tq % 32 == 0 or tq == n, "row tile must tile N (x32)"

    kernel = functools.partial(_gat_attn_kernel, alpha=alpha, nheads=nheads,
                               fout=fout, reduce_heads=reduce_heads)
    return pl.pallas_call(
        kernel,
        out_shape=jax.ShapeDtypeStruct((n, out_cols), jnp.float32),
        grid=(n // tq,),
        in_specs=[
            pl.BlockSpec((tq, nheads), lambda i: (i, 0)),            # s_src tile
            pl.BlockSpec((nheads, n), lambda i: (0, 0)),             # s_dst, resident
            pl.BlockSpec((nheads, n, fout + 1), lambda i: (0, 0, 0)),  # bf16 agg RHS
            pl.BlockSpec((tq, n), lambda i: (i, 0)),                 # int8 adj tile
        ],
        out_specs=pl.BlockSpec((tq, out_cols), lambda i: (i, 0)),
        # TODO(synk): for very large graphs add a key-tile grid axis + bit-packed
        # mask so the (tq, N) / (H, N, Fout+1) operands need not be fully resident.
        compiler_params=pltpu.CompilerParams(
            dimension_semantics=("parallel",),
            vmem_limit_bytes=48 * 1024 * 1024),
    )(s_src, s_dst_t, h_aug, mask_i8)


# --------------------------- parameters / forward ---------------------------

def _xavier_normal(key, shape, gain):
    fan_in, fan_out = shape[-2], shape[-1]
    std = gain * jnp.sqrt(2.0 / (fan_in + fan_out))
    return std * jax.random.normal(key, shape, dtype=jnp.float32)


def _bank_params(kw, ka, fin, fout, nheads):
    """Per-head xavier_normal(gain=1.414); W packed head-major along columns,
    attention vectors packed block-diagonally so all heads' logits come from
    one dense matmul."""
    gain = 1.414
    w = _xavier_normal(kw, (nheads, fin, fout), gain)
    w_packed = jnp.transpose(w, (1, 0, 2)).reshape(fin, nheads * fout)
    a = _xavier_normal(ka, (nheads, 1, 2 * fout), gain)
    a_src = a[:, 0, :fout]                                   # (H, Fout)
    a_dst = a[:, 0, fout:]                                   # (H, Fout)
    eye = jnp.eye(nheads, dtype=jnp.float32)
    a_src_blk = (a_src[:, :, None] * eye[:, None, :]).reshape(nheads * fout, nheads)
    a_dst_blk = (a_dst[:, :, None] * eye[:, None, :]).reshape(nheads * fout, nheads)
    return w_packed, a_src_blk, a_dst_blk


def init_spgat_params(key, nfeat, nhid, nclass, nheads):
    keys = jax.random.split(key, 6)
    p = {}
    p["W1"], p["A1_src"], p["A1_dst"] = _bank_params(keys[0], keys[1],
                                                     nfeat, nhid, nheads)
    p["W2"], p["A2_src"], p["A2_dst"] = _bank_params(keys[2], keys[3],
                                                     nhid * nheads, nhid, nheads)
    p["W3"], p["A3_src"], p["A3_dst"] = _bank_params(keys[4], keys[5],
                                                     nhid * nheads, nclass, nheads)
    return p


@functools.partial(jax.jit, static_argnames=("alpha", "nheads"))
def spgat_forward(x, adj, params, *, alpha, nheads):
    mask_i8 = (adj != 0).astype(jnp.int8)        # 4x less HBM traffic than f32

    # TODO(synk): at tiny benchmark shapes the three banks could be fused into
    # one pallas_call to save two launches / HBM round trips.
    x1 = gat_layer(x, mask_i8, params["W1"], params["A1_src"], params["A1_dst"],
                   alpha=alpha, nheads=nheads)                     # (N, H*nhid)
    x2 = gat_layer(x1, mask_i8, params["W2"], params["A2_src"], params["A2_dst"],
                   alpha=alpha, nheads=nheads)                     # (N, H*nhid)
    # output bank (concat=True heads): mean over heads of elu(h'), then elu.
    out = gat_layer(x2, mask_i8, params["W3"], params["A3_src"], params["A3_dst"],
                    alpha=alpha, nheads=nheads, reduce_heads=True)  # (N, nclass)
    return _elu(out)


if __name__ == "__main__":
    # small, TPU-friendly shapes
    N, nfeat, nhid, nclass, nheads = 32, 16, 8, 4, 2
    alpha = 0.2

    key = jax.random.PRNGKey(0)
    k_x, k_adj, k_p = jax.random.split(key, 3)

    x = jax.random.normal(k_x, (N, nfeat), dtype=jnp.float32)
    # random sparse-ish adjacency with self loops (only structure matters)
    adj = (jax.random.uniform(k_adj, (N, N)) < 0.2).astype(jnp.float32)
    adj = jnp.maximum(adj, jnp.eye(N, dtype=jnp.float32))

    params = init_spgat_params(k_p, nfeat, nhid, nclass, nheads)

    out = spgat_forward(x, adj, params, alpha=alpha, nheads=nheads)
    jax.block_until_ready(out)
    assert out.shape == (N, nclass)
    assert not bool(jnp.any(jnp.isnan(out)))
    print("KERNEL_OK")
</pallas_src>

<mosaic_0001>
module attributes {stable_mosaic.version = 11 : i64} {
  func.func @_gat_attn_kernel(%arg0: i32, %arg1: memref<32x2xf32, #tpu.memory_space<vmem>>, %arg2: memref<2x32xf32, #tpu.memory_space<vmem>>, %arg3: memref<2x32x5xbf16, #tpu.memory_space<vmem>>, %arg4: memref<32x32xi8, #tpu.memory_space<vmem>>, %arg5: memref<32x4xf32, #tpu.memory_space<vmem>>) attributes {dimension_semantics = [#tpu.dimension_semantics<parallel>], iteration_bounds = array<i64: 1>, scalar_prefetch = 0 : i64, scratch_operands = 0 : i64, tpu.core_type = #tpu.core_type<tc>, window_params = [{transform_indices = @transform_0, window_bounds = array<i64: 32, 2>}, {pipeline_mode = #tpu.pipeline_mode<synchronous>, transform_indices = @transform_1, window_bounds = array<i64: 2, 32>}, {pipeline_mode = #tpu.pipeline_mode<synchronous>, transform_indices = @transform_2, window_bounds = array<i64: 2, 32, 5>}, {transform_indices = @transform_3, window_bounds = array<i64: 32, 32>}, {transform_indices = @transform_4, window_bounds = array<i64: 32, 4>}]} {
    %c0 = arith.constant 0 : index
    %c0_0 = arith.constant 0 : index
    %0 = vector.load %arg4[%c0, %c0_0] : memref<32x32xi8, #tpu.memory_space<vmem>>, vector<32x32xi8>
    %c0_i8 = arith.constant 0 : i8
    %1 = vector.broadcast %c0_i8 : i8 to vector<32x32xi8>
    %2 = arith.cmpi ne, %0, %1 : vector<32x32xi8>
    %cst = arith.constant 0.000000e+00 : f32
    %3 = vector.broadcast %cst : f32 to vector<32x4xf32>
    %c0_1 = arith.constant 0 : index
    %c0_2 = arith.constant 0 : index
    %4 = vector.load %arg1[%c0_1, %c0_2] : memref<32x2xf32, #tpu.memory_space<vmem>>, vector<32x1xf32>
    %c0_3 = arith.constant 0 : index
    %c0_4 = arith.constant 0 : index
    %5 = vector.load %arg2[%c0_3, %c0_4] : memref<2x32xf32, #tpu.memory_space<vmem>>, vector<1x32xf32>
    %6 = vector.broadcast %4 : vector<32x1xf32> to vector<32x32xf32>
    %7 = vector.broadcast %5 : vector<1x32xf32> to vector<32x32xf32>
    %8 = arith.addf %6, %7 : vector<32x32xf32>
    %cst_5 = arith.constant 0.000000e+00 : f32
    %9 = vector.broadcast %cst_5 : f32 to vector<32x32xf32>
    %10 = arith.cmpf ogt, %8, %9 : vector<32x32xf32>
    %cst_6 = arith.constant 2.000000e-01 : f32
    %11 = vector.broadcast %cst_6 : f32 to vector<32x32xf32>
    %12 = arith.mulf %11, %8 : vector<32x32xf32>
    %13 = arith.select %10, %8, %12 : vector<32x32xi1>, vector<32x32xf32>
    %cst_7 = arith.constant 0.000000e+00 : f32
    %14 = vector.broadcast %cst_7 : f32 to vector<32x32xf32>
    %15 = arith.subf %14, %13 : vector<32x32xf32>
    %cst_8 = arith.constant -1.000000e+30 : f32
    %16 = vector.broadcast %cst_8 : f32 to vector<32x32xf32>
    %17 = arith.select %2, %15, %16 : vector<32x32xi1>, vector<32x32xf32>
    %18 = math.exp %17 : vector<32x32xf32>
    %19 = arith.truncf %18 : vector<32x32xf32> to vector<32x32xbf16>
    %c0_9 = arith.constant 0 : index
    %c0_10 = arith.constant 0 : index
    %c0_11 = arith.constant 0 : index
    %20 = vector.load %arg3[%c0_9, %c0_10, %c0_11] : memref<2x32x5xbf16, #tpu.memory_space<vmem>>, vector<1x32x5xbf16>
    %21 = vector.shape_cast %20 : vector<1x32x5xbf16> to vector<32x5xbf16>
    %cst_12 = arith.constant dense<0.000000e+00> : vector<32x5xf32>
    %22 = tpu.matmul %19, %21, %cst_12 {dimension_numbers = #tpu.dot_dimension_numbers<[1], [0], [0], [1], [0, 0, 1, 1], [], []>} : vector<32x32xbf16>, vector<32x5xbf16>, vector<32x5xf32> -> vector<32x5xf32>
    %23 = vector.extract_strided_slice %22 {offsets = [0, 4], sizes = [32, 1], strides = [1, 1]} : vector<32x5xf32> to vector<32x1xf32>
    %cst_13 = arith.constant 9.99999974E-6 : f32
    %24 = vector.broadcast %cst_13 : f32 to vector<32x1xf32>
    %25 = arith.addf %23, %24 : vector<32x1xf32>
    %26 = vector.extract_strided_slice %22 {offsets = [0, 0], sizes = [32, 4], strides = [1, 1]} : vector<32x5xf32> to vector<32x4xf32>
    %27 = vector.broadcast %25 : vector<32x1xf32> to vector<32x4xf32>
    %28 = arith.divf %26, %27 : vector<32x4xf32>
    %cst_14 = arith.constant 0.000000e+00 : f32
    %29 = vector.broadcast %cst_14 : f32 to vector<32x4xf32>
    %30 = arith.cmpf ogt, %28, %29 : vector<32x4xf32>
    %cst_15 = arith.constant 0.000000e+00 : f32
    %31 = vector.broadcast %cst_15 : f32 to vector<32x4xf32>
    %32 = arith.minimumf %28, %31 : vector<32x4xf32>
    %33 = math.exp %32 : vector<32x4xf32>
    %cst_16 = arith.constant 1.000000e+00 : f32
    %34 = vector.broadcast %cst_16 : f32 to vector<32x4xf32>
    %35 = arith.subf %33, %34 : vector<32x4xf32>
    %36 = arith.select %30, %28, %35 : vector<32x4xi1>, vector<32x4xf32>
    %37 = arith.addf %3, %36 : vector<32x4xf32>
    %c0_17 = arith.constant 0 : index
    %c1 = arith.constant 1 : index
    %38 = vector.load %arg1[%c0_17, %c1] : memref<32x2xf32, #tpu.memory_space<vmem>>, vector<32x1xf32>
    %c1_18 = arith.constant 1 : index
    %c0_19 = arith.constant 0 : index
    %39 = vector.load %arg2[%c1_18, %c0_19] : memref<2x32xf32, #tpu.memory_space<vmem>>, vector<1x32xf32>
    %40 = vector.broadcast %38 : vector<32x1xf32> to vector<32x32xf32>
    %41 = vector.broadcast %39 : vector<1x32xf32> to vector<32x32xf32>
    %42 = arith.addf %40, %41 : vector<32x32xf32>
    %cst_20 = arith.constant 0.000000e+00 : f32
    %43 = vector.broadcast %cst_20 : f32 to vector<32x32xf32>
    %44 = arith.cmpf ogt, %42, %43 : vector<32x32xf32>
    %cst_21 = arith.constant 2.000000e-01 : f32
    %45 = vector.broadcast %cst_21 : f32 to vector<32x32xf32>
    %46 = arith.mulf %45, %42 : vector<32x32xf32>
    %47 = arith.select %44, %42, %46 : vector<32x32xi1>, vector<32x32xf32>
    %cst_22 = arith.constant 0.000000e+00 : f32
    %48 = vector.broadcast %cst_22 : f32 to vector<32x32xf32>
    %49 = arith.subf %48, %47 : vector<32x32xf32>
    %cst_23 = arith.constant -1.000000e+30 : f32
    %50 = vector.broadcast %cst_23 : f32 to vector<32x32xf32>
    %51 = arith.select %2, %49, %50 : vector<32x32xi1>, vector<32x32xf32>
    %52 = math.exp %51 : vector<32x32xf32>
    %53 = arith.truncf %52 : vector<32x32xf32> to vector<32x32xbf16>
    %c1_24 = arith.constant 1 : index
    %c0_25 = arith.constant 0 : index
    %c0_26 = arith.constant 0 : index
    %54 = vector.load %arg3[%c1_24, %c0_25, %c0_26] : memref<2x32x5xbf16, #tpu.memory_space<vmem>>, vector<1x32x5xbf16>
    %55 = vector.shape_cast %54 : vector<1x32x5xbf16> to vector<32x5xbf16>
    %cst_27 = arith.constant dense<0.000000e+00> : vector<32x5xf32>
    %56 = tpu.matmul %53, %55, %cst_27 {dimension_numbers = #tpu.dot_dimension_numbers<[1], [0], [0], [1], [0, 0, 1, 1], [], []>} : vector<32x32xbf16>, vector<32x5xbf16>, vector<32x5xf32> -> vector<32x5xf32>
    %57 = vector.extract_strided_slice %56 {offsets = [0, 4], sizes = [32, 1], strides = [1, 1]} : vector<32x5xf32> to vector<32x1xf32>
    %cst_28 = arith.constant 9.99999974E-6 : f32
    %58 = vector.broadcast %cst_28 : f32 to vector<32x1xf32>
    %59 = arith.addf %57, %58 : vector<32x1xf32>
    %60 = vector.extract_strided_slice %56 {offsets = [0, 0], sizes = [32, 4], strides = [1, 1]} : vector<32x5xf32> to vector<32x4xf32>
    %61 = vector.broadcast %59 : vector<32x1xf32> to vector<32x4xf32>
    %62 = arith.divf %60, %61 : vector<32x4xf32>
    %cst_29 = arith.constant 0.000000e+00 : f32
    %63 = vector.broadcast %cst_29 : f32 to vector<32x4xf32>
    %64 = arith.cmpf ogt, %62, %63 : vector<32x4xf32>
    %cst_30 = arith.constant 0.000000e+00 : f32
    %65 = vector.broadcast %cst_30 : f32 to vector<32x4xf32>
    %66 = arith.minimumf %62, %65 : vector<32x4xf32>
    %67 = math.exp %66 : vector<32x4xf32>
    %cst_31 = arith.constant 1.000000e+00 : f32
    %68 = vector.broadcast %cst_31 : f32 to vector<32x4xf32>
    %69 = arith.subf %67, %68 : vector<32x4xf32>
    %70 = arith.select %64, %62, %69 : vector<32x4xi1>, vector<32x4xf32>
    %71 = arith.addf %37, %70 : vector<32x4xf32>
    %cst_32 = arith.constant 5.000000e-01 : f32
    %72 = vector.broadcast %cst_32 : f32 to vector<32x4xf32>
    %73 = arith.mulf %71, %72 : vector<32x4xf32>
    %c0_33 = arith.constant 0 : index
    %c0_34 = arith.constant 0 : index
    %74 = vector.load %arg5[%c0_33, %c0_34] : memref<32x4xf32, #tpu.memory_space<vmem>>, vector<32x4xf32>
    tpu.vector_store %arg5[%c0_33, %c0_34], %73 {strides = array<i32>} : memref<32x4xf32, #tpu.memory_space<vmem>>, vector<32x4xf32>,
    return
  }
  func.func @transform_0(%arg0: i32) -> (i32, i32) {
    %c0_i32 = arith.constant 0 : i32
    %c0_i32_0 = arith.constant 0 : i32
    return %arg0, %c0_i32 : i32, i32
  }
  func.func @transform_1(%arg0: i32) -> (i32, i32) {
    %c0_i32 = arith.constant 0 : i32
    %c0_i32_0 = arith.constant 0 : i32
    %c0_i32_1 = arith.constant 0 : i32
    return %c0_i32, %c0_i32_0 : i32, i32
  }
  func.func @transform_2(%arg0: i32) -> (i32, i32, i32) {
    %c0_i32 = arith.constant 0 : i32
    %c0_i32_0 = arith.constant 0 : i32
    %c0_i32_1 = arith.constant 0 : i32
    %c0_i32_2 = arith.constant 0 : i32
    return %c0_i32, %c0_i32_0, %c0_i32_1 : i32, i32, i32
  }
  func.func @transform_3(%arg0: i32) -> (i32, i32) {
    %c0_i32 = arith.constant 0 : i32
    %c0_i32_0 = arith.constant 0 : i32
    return %arg0, %c0_i32 : i32, i32
  }
  func.func @transform_4(%arg0: i32) -> (i32, i32) {
    %c0_i32 = arith.constant 0 : i32
    %c0_i32_0 = arith.constant 0 : i32
    return %arg0, %c0_i32 : i32, i32
  }
}

module attributes {stable_mosaic.version = 11 : i64} {
  func.func @_gat_attn_kernel(%arg0: i32, %arg1: memref<32x2xf32, #tpu.memory_space<vmem>>, %arg2: memref<2x32xf32, #tpu.memory_space<vmem>>, %arg3: memref<2x32x9xbf16, #tpu.memory_space<vmem>>, %arg4: memref<32x32xi8, #tpu.memory_space<vmem>>, %arg5: memref<32x16xf32, #tpu.memory_space<vmem>>) attributes {dimension_semantics = [#tpu.dimension_semantics<parallel>], iteration_bounds = array<i64: 1>, scalar_prefetch = 0 : i64, scratch_operands = 0 : i64, tpu.core_type = #tpu.core_type<tc>, window_params = [{transform_indices = @transform_0, window_bounds = array<i64: 32, 2>}, {pipeline_mode = #tpu.pipeline_mode<synchronous>, transform_indices = @transform_1, window_bounds = array<i64: 2, 32>}, {pipeline_mode = #tpu.pipeline_mode<synchronous>, transform_indices = @transform_2, window_bounds = array<i64: 2, 32, 9>}, {transform_indices = @transform_3, window_bounds = array<i64: 32, 32>}, {transform_indices = @transform_4, window_bounds = array<i64: 32, 16>}]} {
    %c0 = arith.constant 0 : index
    %c0_0 = arith.constant 0 : index
    %0 = vector.load %arg4[%c0, %c0_0] : memref<32x32xi8, #tpu.memory_space<vmem>>, vector<32x32xi8>
    %c0_i8 = arith.constant 0 : i8
    %1 = vector.broadcast %c0_i8 : i8 to vector<32x32xi8>
    %2 = arith.cmpi ne, %0, %1 : vector<32x32xi8>
    %c0_1 = arith.constant 0 : index
    %c0_2 = arith.constant 0 : index
    %3 = vector.load %arg1[%c0_1, %c0_2] : memref<32x2xf32, #tpu.memory_space<vmem>>, vector<32x1xf32>
    %c0_3 = arith.constant 0 : index
    %c0_4 = arith.constant 0 : index
    %4 = vector.load %arg2[%c0_3, %c0_4] : memref<2x32xf32, #tpu.memory_space<vmem>>, vector<1x32xf32>
    %5 = vector.broadcast %3 : vector<32x1xf32> to vector<32x32xf32>
    %6 = vector.broadcast %4 : vector<1x32xf32> to vector<32x32xf32>
    %7 = arith.addf %5, %6 : vector<32x32xf32>
    %cst = arith.constant 0.000000e+00 : f32
    %8 = vector.broadcast %cst : f32 to vector<32x32xf32>
    %9 = arith.cmpf ogt, %7, %8 : vector<32x32xf32>
    %cst_5 = arith.constant 2.000000e-01 : f32
    %10 = vector.broadcast %cst_5 : f32 to vector<32x32xf32>
    %11 = arith.mulf %10, %7 : vector<32x32xf32>
    %12 = arith.select %9, %7, %11 : vector<32x32xi1>, vector<32x32xf32>
    %cst_6 = arith.constant 0.000000e+00 : f32
    %13 = vector.broadcast %cst_6 : f32 to vector<32x32xf32>
    %14 = arith.subf %13, %12 : vector<32x32xf32>
    %cst_7 = arith.constant -1.000000e+30 : f32
    %15 = vector.broadcast %cst_7 : f32 to vector<32x32xf32>
    %16 = arith.select %2, %14, %15 : vector<32x32xi1>, vector<32x32xf32>
    %17 = math.exp %16 : vector<32x32xf32>
    %18 = arith.truncf %17 : vector<32x32xf32> to vector<32x32xbf16>
    %c0_8 = arith.constant 0 : index
    %c0_9 = arith.constant 0 : index
    %c0_10 = arith.constant 0 : index
    %19 = vector.load %arg3[%c0_8, %c0_9, %c0_10] : memref<2x32x9xbf16, #tpu.memory_space<vmem>>, vector<1x32x9xbf16>
    %20 = vector.shape_cast %19 : vector<1x32x9xbf16> to vector<32x9xbf16>
    %cst_11 = arith.constant dense<0.000000e+00> : vector<32x9xf32>
    %21 = tpu.matmul %18, %20, %cst_11 {dimension_numbers = #tpu.dot_dimension_numbers<[1], [0], [0], [1], [0, 0, 1, 1], [], []>} : vector<32x32xbf16>, vector<32x9xbf16>, vector<32x9xf32> -> vector<32x9xf32>
    %22 = vector.extract_strided_slice %21 {offsets = [0, 8], sizes = [32, 1], strides = [1, 1]} : vector<32x9xf32> to vector<32x1xf32>
    %cst_12 = arith.constant 9.99999974E-6 : f32
    %23 = vector.broadcast %cst_12 : f32 to vector<32x1xf32>
    %24 = arith.addf %22, %23 : vector<32x1xf32>
    %25 = vector.extract_strided_slice %21 {offsets = [0, 0], sizes = [32, 8], strides = [1, 1]} : vector<32x9xf32> to vector<32x8xf32>
    %26 = vector.broadcast %24 : vector<32x1xf32> to vector<32x8xf32>
    %27 = arith.divf %25, %26 : vector<32x8xf32>
    %cst_13 = arith.constant 0.000000e+00 : f32
    %28 = vector.broadcast %cst_13 : f32 to vector<32x8xf32>
    %29 = arith.cmpf ogt, %27, %28 : vector<32x8xf32>
    %cst_14 = arith.constant 0.000000e+00 : f32
    %30 = vector.broadcast %cst_14 : f32 to vector<32x8xf32>
    %31 = arith.minimumf %27, %30 : vector<32x8xf32>
    %32 = math.exp %31 : vector<32x8xf32>
    %cst_15 = arith.constant 1.000000e+00 : f32
    %33 = vector.broadcast %cst_15 : f32 to vector<32x8xf32>
    %34 = arith.subf %32, %33 : vector<32x8xf32>
    %35 = arith.select %29, %27, %34 : vector<32x8xi1>, vector<32x8xf32>
    %c0_16 = arith.constant 0 : index
    %c0_17 = arith.constant 0 : index
    %36 = vector.load %arg5[%c0_16, %c0_17] : memref<32x16xf32, #tpu.memory_space<vmem>>, vector<32x8xf32>
    tpu.vector_store %arg5[%c0_16, %c0_17], %35 {strides = array<i32>} : memref<32x16xf32, #tpu.memory_space<vmem>>, vector<32x8xf32>,
    %c0_18 = arith.constant 0 : index
    %c1 = arith.constant 1 : index
    %37 = vector.load %arg1[%c0_18, %c1] : memref<32x2xf32, #tpu.memory_space<vmem>>, vector<32x1xf32>
    %c1_19 = arith.constant 1 : index
    %c0_20 = arith.constant 0 : index
    %38 = vector.load %arg2[%c1_19, %c0_20] : memref<2x32xf32, #tpu.memory_space<vmem>>, vector<1x32xf32>
    %39 = vector.broadcast %37 : vector<32x1xf32> to vector<32x32xf32>
    %40 = vector.broadcast %38 : vector<1x32xf32> to vector<32x32xf32>
    %41 = arith.addf %39, %40 : vector<32x32xf32>
    %cst_21 = arith.constant 0.000000e+00 : f32
    %42 = vector.broadcast %cst_21 : f32 to vector<32x32xf32>
    %43 = arith.cmpf ogt, %41, %42 : vector<32x32xf32>
    %cst_22 = arith.constant 2.000000e-01 : f32
    %44 = vector.broadcast %cst_22 : f32 to vector<32x32xf32>
    %45 = arith.mulf %44, %41 : vector<32x32xf32>
    %46 = arith.select %43, %41, %45 : vector<32x32xi1>, vector<32x32xf32>
    %cst_23 = arith.constant 0.000000e+00 : f32
    %47 = vector.broadcast %cst_23 : f32 to vector<32x32xf32>
    %48 = arith.subf %47, %46 : vector<32x32xf32>
    %cst_24 = arith.constant -1.000000e+30 : f32
    %49 = vector.broadcast %cst_24 : f32 to vector<32x32xf32>
    %50 = arith.select %2, %48, %49 : vector<32x32xi1>, vector<32x32xf32>
    %51 = math.exp %50 : vector<32x32xf32>
    %52 = arith.truncf %51 : vector<32x32xf32> to vector<32x32xbf16>
    %c1_25 = arith.constant 1 : index
    %c0_26 = arith.constant 0 : index
    %c0_27 = arith.constant 0 : index
    %53 = vector.load %arg3[%c1_25, %c0_26, %c0_27] : memref<2x32x9xbf16, #tpu.memory_space<vmem>>, vector<1x32x9xbf16>
    %54 = vector.shape_cast %53 : vector<1x32x9xbf16> to vector<32x9xbf16>
    %cst_28 = arith.constant dense<0.000000e+00> : vector<32x9xf32>
    %55 = tpu.matmul %52, %54, %cst_28 {dimension_numbers = #tpu.dot_dimension_numbers<[1], [0], [0], [1], [0, 0, 1, 1], [], []>} : vector<32x32xbf16>, vector<32x9xbf16>, vector<32x9xf32> -> vector<32x9xf32>
    %56 = vector.extract_strided_slice %55 {offsets = [0, 8], sizes = [32, 1], strides = [1, 1]} : vector<32x9xf32> to vector<32x1xf32>
    %cst_29 = arith.constant 9.99999974E-6 : f32
    %57 = vector.broadcast %cst_29 : f32 to vector<32x1xf32>
    %58 = arith.addf %56, %57 : vector<32x1xf32>
    %59 = vector.extract_strided_slice %55 {offsets = [0, 0], sizes = [32, 8], strides = [1, 1]} : vector<32x9xf32> to vector<32x8xf32>
    %60 = vector.broadcast %58 : vector<32x1xf32> to vector<32x8xf32>
    %61 = arith.divf %59, %60 : vector<32x8xf32>
    %cst_30 = arith.constant 0.000000e+00 : f32
    %62 = vector.broadcast %cst_30 : f32 to vector<32x8xf32>
    %63 = arith.cmpf ogt, %61, %62 : vector<32x8xf32>
    %cst_31 = arith.constant 0.000000e+00 : f32
    %64 = vector.broadcast %cst_31 : f32 to vector<32x8xf32>
    %65 = arith.minimumf %61, %64 : vector<32x8xf32>
    %66 = math.exp %65 : vector<32x8xf32>
    %cst_32 = arith.constant 1.000000e+00 : f32
    %67 = vector.broadcast %cst_32 : f32 to vector<32x8xf32>
    %68 = arith.subf %66, %67 : vector<32x8xf32>
    %69 = arith.select %63, %61, %68 : vector<32x8xi1>, vector<32x8xf32>
    %c0_33 = arith.constant 0 : index
    %c8 = arith.constant 8 : index
    %70 = vector.load %arg5[%c0_33, %c8] : memref<32x16xf32, #tpu.memory_space<vmem>>, vector<32x8xf32>
    tpu.vector_store %arg5[%c0_33, %c8], %69 {strides = array<i32>} : memref<32x16xf32, #tpu.memory_space<vmem>>, vector<32x8xf32>,
    return
  }
  func.func @transform_0(%arg0: i32) -> (i32, i32) {
    %c0_i32 = arith.constant 0 : i32
    %c0_i32_0 = arith.constant 0 : i32
    return %arg0, %c0_i32 : i32, i32
  }
  func.func @transform_1(%arg0: i32) -> (i32, i32) {
    %c0_i32 = arith.constant 0 : i32
    %c0_i32_0 = arith.constant 0 : i32
    %c0_i32_1 = arith.constant 0 : i32
    return %c0_i32, %c0_i32_0 : i32, i32
  }
  func.func @transform_2(%arg0: i32) -> (i32, i32, i32) {
    %c0_i32 = arith.constant 0 : i32
    %c0_i32_0 = arith.constant 0 : i32
    %c0_i32_1 = arith.constant 0 : i32
    %c0_i32_2 = arith.constant 0 : i32
    return %c0_i32, %c0_i32_0, %c0_i32_1 : i32, i32, i32
  }
  func.func @transform_3(%arg0: i32) -> (i32, i32) {
    %c0_i32 = arith.constant 0 : i32
    %c0_i32_0 = arith.constant 0 : i32
    return %arg0, %c0_i32 : i32, i32
  }
  func.func @transform_4(%arg0: i32) -> (i32, i32) {
    %c0_i32 = arith.constant 0 : i32
    %c0_i32_0 = arith.constant 0 : i32
    return %arg0, %c0_i32 : i32, i32
  }
}

</mosaic_0001>

<bundles_post_ra>
// kernel: spgat_forward.3
= control target key start
LH: loop header
LB: loop body
LE: loop exit
PB: predicated region body
PF: predicated region fallthrough
CT: control target
= control target key end

     0   :  { %v571_v0 = vmov 1   ;;  %v572_v5 = vmov 0   ;;  %s693_s0 = inlined_call_operand.vmem [shape: f32[32,2], index: 0, kind: input, shape index: {}]   ;;  %s694_s2 = inlined_call_operand.vmem [shape: bf16[2,32,9], index: 2, kind: input, shape index: {}]   ;;  %s695_s3 = inlined_call_operand.vmem [shape: s8[32,32], index: 3, kind: input, shape index: {}]   ;;  %s696_s1 = inlined_call_operand.vmem [shape: f32[2,32], index: 1, kind: input, shape index: {}]   ;;  %s697_s4 = inlined_call_operand.vmem [shape: f32[32,16], index: 4, kind: output, shape index: {}]  }
   0x1   :  { %514 = vset.pattern.permute.xlu1 %v571_v0  ;;  %513 = vset.pattern.permute.xlu0 %v571_v0  ;;  %v249_v1 = vld [vmem:[%s693_s0 + $0x10] sm:$0xff]  ;;  %v247_v2 = vld [vmem:[%s693_s0] sm:$0xff]  ;;  %v250_v3 = vld [vmem:[%s693_s0 + $0x18] sm:$0xff] }
   0x2   :  { %264 = vperm.xlu1 %514, %v249_v1   ;;  %254 = vperm.xlu0 %513, %v247_v2   ;;  %v248_v4 = vld [vmem:[%s693_s0 + $0x8] sm:$0xff]  ;;  %v519_v6 = vld [vmem:[%s694_s2 + $0x18] sm:$0xff]   ;;  %v520_v7 = vld [vmem:[%s694_s2 + $0x10] sm:$0xff]  }
   0x3   :  { %501 = vmatprep.subr.bf16.mxu1 %v519_v6  ;;  %v521_v8 = vld [vmem:[%s694_s2 + $0x8] sm:$0xff]   ;;  %v522_v9 = vld [vmem:[%s694_s2] sm:$0xff]  }
   0x4   :  { %502 = vmatpush3.bf16.msra.mxu1 %v519_v6  ;;  %493 = vmatprep.subr.bf16.mxu0 %v521_v8  ;;  %v20_v10 = vld [vmem:[%s695_s3] sm:$0xff] }
   0x5   :  { %503 = vmatprep.subr.bf16.mxu1 %v520_v7  ;;  %494 = vmatpush3.bf16.msra.mxu0 %v521_v8  ;;  %vm21_vm0 = vnez %v20_v10  ;;  %v472_v26 = vld [vmem:[%s696_s1 + $0x1] ss:$0 sm:$0xff]  ;;  %v463_v49 = vld [vmem:[%s696_s1] ss:$0 sm:$0xff]  ;;  %s574_s1 = smov 8  }
   0x6   :  { %269 = vperm.xlu1 %514, %v250_v3   ;;  %259 = vperm.xlu0 %513, %v248_v4   ;;  %v71_v11 = vsel %vm21_vm0, 16843009, %v572_v5 }
   0x7   :  { %495 = vmatprep.subr.bf16.mxu0 %v522_v9  ;;  %v74_v12 = vunpack.c.2.s8 %v71_v11  ;;  %v72_v13 = vunpack.c.0.s8 %v71_v11  ;;  %v75_v16 = vunpack.c.3.s8 %v71_v11  ;;  %v73_v17 = vunpack.c.1.s8 %v71_v11 }
   0x8   :  { %504 = vmatpush3.bf16.msra.mxu1 %v520_v7 }
   0x9   :  { %496 = vmatpush3.bf16.msra.mxu0 %v522_v9  ;;  %v80_v14 = vpack.c.b16 %v74_v12, %v74_v12  ;;  %v76_v15 = vpack.c.b16 %v72_v13, %v72_v13  ;;  %v82_v20 = vpack.c.b16 %v75_v16, %v75_v16  ;;  %v78_v21 = vpack.c.b16 %v73_v17, %v73_v17 }
   0xa   :  { %516 = vset.pattern.permute.xlu1 %v572_v5  ;;  %515 = vset.pattern.permute.xlu0 %v572_v5 }
   0xb   :  { %34 = vperm.xlu1 %516, %v248_v4   ;;  %29 = vperm.xlu0 %515, %v247_v2   ;;  %v81_v18 = vpack.c.b8 %v80_v14, %v80_v14  ;;  %v77_v19 = vpack.c.b8 %v76_v15, %v76_v15  ;;  %v83_v22 = vpack.c.b8 %v82_v20, %v82_v20 }
   0xc   :  { %v79_v23 = vpack.c.b8 %v78_v21, %v78_v21 }
   0xd   :  { %vm86_vm1 = vnez %v81_v18  ;;  %vm84_vm2 = vnez %v77_v19  ;;  %vm87_vm3 = vnez %v83_v22 }
   0xe   :  { %v90_v24 = vsel %vm86_vm1, 16843009, %v572_v5  ;;  %v88_v25 = vsel %vm84_vm2, 16843009, %v572_v5  ;;  %vm85_vm4 = vnez %v79_v23  ;;  %v91_v33 = vsel %vm87_vm3, 16843009, %v572_v5 }
   0xf   :  { %39 = vperm.xlu1 %516, %v249_v1   ;;  %44 = vperm.xlu0 %515, %v250_v3   ;;  %v94_v27 = vunpack.c.0.s8 %v90_v24  ;;  %v92_v29 = vunpack.c.0.s8 %v88_v25  ;;  %v89_v34 = vsel %vm85_vm4, 16843009, %v572_v5  ;;  %v95_v39 = vunpack.c.0.s8 %v91_v33 }
  0x10   :  { %v93_v41 = vunpack.c.0.s8 %v89_v34  ;;  %vm130_vm1 = vcmask 261120  }
  0x11   :  { %vm630_vm7 = vcmp.ne.s32.totalorder %v94_v27, 0  ;;  %vm634_vm8 = vcmp.ne.s32.totalorder %v92_v29, 0  ;;  %vm645_vm11 = vcmp.ne.s32.totalorder %v95_v39, 0 }
  0x12   :  { %vm649_vm12 = vcmp.ne.s32.totalorder %v93_v41, 0 }
  0x7d   :  { %v265_v28 = vpop.permute.xlu1 %264  ;;  %v255_v30 = vpop.permute.xlu0 %254 }
  0x7e   :  { %v278_v31 = vadd.f32 %v472_v26, %v265_v28  ;;  %v276_v32 = vadd.f32 %v472_v26, %v255_v30 }
  0x80   :  { %vm282_vm5 = vcmp.gt.f32.partialorder %v278_v31, 0.0  ;;  %v286_v35 = vmul.f32 0.2, %v278_v31  ;;  %vm280_vm6 = vcmp.gt.f32.partialorder %v276_v32, 0.0  ;;  %v284_v36 = vmul.f32 0.2, %v276_v32 }
  0x81   :  { %v270_v40 = vpop.permute.xlu1 %269  ;;  %v260_v42 = vpop.permute.xlu0 %259 }
  0x82   :  { %v290_v43 = vsel %vm282_vm5, %v278_v31, %v286_v35  ;;  %v288_v44 = vsel %vm280_vm6, %v276_v32, %v284_v36  ;;  %v279_v45 = vadd.f32 %v472_v26, %v270_v40  ;;  %v277_v46 = vadd.f32 %v472_v26, %v260_v42 }
  0x83   :  { %v294_v47 = vsub.f32 0.0, %v290_v43  ;;  %v292_v48 = vsub.f32 0.0, %v288_v44  ;;  %v573_v42 = vmov 8   ;;  %vm242_vm6 = vcmask 64512  }
  0x84   :  { %vm283_vm9 = vcmp.gt.f32.partialorder %v279_v45, 0.0  ;;  %v287_v50 = vmul.f32 0.2, %v279_v45  ;;  %vm281_vm10 = vcmp.gt.f32.partialorder %v277_v46, 0.0  ;;  %v285_v51 = vmul.f32 0.2, %v277_v46  ;;  %517 = vset.pattern.permute.xlu1 %v573_v42  ;;  %518 = vset.pattern.permute.xlu0 %v573_v42 }
  0x85   :  { %v298_v52 = vsel %vm630_vm7, %v294_v47, -1e+30  ;;  %v296_v53 = vsel %vm634_vm8, %v292_v48, -1e+30 }
  0x86   :  { %v304_v56 = vmul.f32 1.442695, %v298_v52  ;;  %v300_v57 = vmul.f32 1.442695, %v296_v53  ;;  %v291_v58 = vsel %vm283_vm9, %v279_v45, %v287_v50  ;;  %v289_v59 = vsel %vm281_vm10, %v277_v46, %v285_v51  ;;  %v35_v60 = vpop.permute.xlu1 %34  ;;  %v30_v61 = vpop.permute.xlu0 %29 }
  0x87   :  { %v295_v62 = vsub.f32 0.0, %v291_v58  ;;  %v293_v63 = vsub.f32 0.0, %v289_v59  ;;  %v52_v0 = vadd.f32 %v463_v49, %v35_v60  ;;  %v51_v1 = vadd.f32 %v463_v49, %v30_v61 }
  0x88   :  { %523 = vpow2.f32 %v304_v56 }
  0x89   :  { %v299_v2 = vsel %vm645_vm11, %v295_v62, -1e+30  ;;  %v297_v3 = vsel %vm649_vm12, %v293_v63, -1e+30  ;;  %vm56_vm13 = vcmp.gt.f32.partialorder %v52_v0, 0.0  ;;  %525 = vpow2.f32 %v300_v57 }
  0x8a   :  { %v306_v4 = vmul.f32 1.442695, %v299_v2  ;;  %v302_v5 = vmul.f32 1.442695, %v297_v3  ;;  %v60_v6 = vmul.f32 0.2, %v52_v0  ;;  %v40_v7 = vpop.permute.xlu1 %39  ;;  %v45_v8 = vpop.permute.xlu0 %44 }
  0x8b   :  { %vm55_vm14 = vcmp.gt.f32.partialorder %v51_v1, 0.0  ;;  %v59_v9 = vmul.f32 0.2, %v51_v1  ;;  %v53_v10 = vadd.f32 %v463_v49, %v40_v7  ;;  %v54_v11 = vadd.f32 %v463_v49, %v45_v8 }
  0x8c   :  { %527 = vpow2.f32 %v306_v4  ;;  %v64_v12 = vsel %vm56_vm13, %v52_v0, %v60_v6 }
  0x8d   :  { %529 = vpow2.f32 %v302_v5  ;;  %v68_v13 = vsub.f32 0.0, %v64_v12  ;;  %v63_v14 = vsel %vm55_vm14, %v51_v1, %v59_v9  ;;  %vm57_vm15 = vcmp.gt.f32.partialorder %v53_v10, 0.0 }
  0x8e   :  { %v67_v15 = vsub.f32 0.0, %v63_v14  ;;  %v61_v16 = vmul.f32 0.2, %v53_v10  ;;  %vm58_vm0 = vcmp.gt.f32.partialorder %v54_v11, 0.0  ;;  %v62_v17 = vmul.f32 0.2, %v54_v11 }
  0x8f   :  { %v101_v18 = vsel %vm649_vm12, %v68_v13, -1e+30 }
  0x90   :  { %v106_v19 = vmul.f32 1.442695, %v101_v18  ;;  %v100_v20 = vsel %vm634_vm8, %v67_v15, -1e+30  ;;  %v65_v21 = vsel %vm57_vm15, %v53_v10, %v61_v16  ;;  %v66_v22 = vsel %vm58_vm0, %v54_v11, %v62_v17 }
  0x91   :  { %v104_v23 = vmul.f32 1.442695, %v100_v20  ;;  %v69_v24 = vsub.f32 0.0, %v65_v21  ;;  %v70_v25 = vsub.f32 0.0, %v66_v22 }
  0x92   :  { %531 = vpow2.f32 %v106_v19 }
  0x93   :  { %533 = vpow2.f32 %v104_v23  ;;  %v102_v26 = vsel %vm630_vm7, %v69_v24, -1e+30  ;;  %v103_v27 = vsel %vm645_vm11, %v70_v25, -1e+30  ;;  %vm454_vm11 = vcmask 130112  }
  0x94   :  { %v108_v28 = vmul.f32 1.442695, %v102_v26  ;;  %v110_v29 = vmul.f32 1.442695, %v103_v27 }
  0x95   :  { %v524_v30 = vpop.eup %523 }
  0x96   :  { %535 = vpow2.f32 %v108_v28  ;;  %v526_v31 = vpop.eup %525 }
  0x97   :  { %537 = vpow2.f32 %v110_v29 }
  0x99   :  { %v528_v32 = vpop.eup %527 }
  0x9a   :  { %v530_v33 = vpop.eup %529  ;;  %v309_v34 = vpack.c.bf16 %v528_v32, %v524_v30 }
  0x9b   :  { %v308_v35 = vpack.c.bf16 %v530_v33, %v526_v31 }
  0x9d   :  { %505 = vmatprep.mubr.msk.bf16.mxu1 %vm130_vm1, %v308_v35 }
  0x9e   :  { %506 = vmatmul.mubr.msk.bf16.vlgmr.msra.gmra.mxu1 %vm130_vm1, %v309_v34 }
  0x9f   :  { %v532_v36 = vpop.eup %531 }
  0xa0   :  { %v534_v38 = vpop.eup %533 }
  0xa1   :  { %v112_v37 = vpack.c.bf16 %v532_v36, %v534_v38 }
  0xa3   :  { %v536_v39 = vpop.eup %535  ;;  %497 = vmatprep.mubr.msk.bf16.mxu0 %vm130_vm1, %v112_v37 }
  0xa4   :  { %v538_v40 = vpop.eup %537 }
  0xa5   :  { %v113_v41 = vpack.c.bf16 %v538_v40, %v536_v39 }
  0xa7   :  { %498 = vmatmul.mubr.msk.bf16.vlgmr.msra.gmra.mxu0 %vm130_vm1, %v113_v41 }
 0x15e   :  { %v507_v43 = vpop.f32.mrf.mxu1 }
 0x15f   :  { %v384_v48 = vadd.f32 1e-05, %v507_v43 }
 0x160   :  { %v367_v44 = vpop.f32.mrf.mxu1 }
 0x161   :  { %v382_v45 = vadd.f32 1e-05, %v367_v44 }
 0x162   :  { %v508_v46 = vpop.f32.mrf.mxu1 }
 0x163   :  { %388 = vperm.xlu1 %517, %v382_v45   ;;  %v385_v51 = vadd.f32 1e-05, %v508_v46 }
 0x164   :  { %v370_v47 = vpop.f32.mrf.mxu1 }
 0x165   :  { %v383_v49 = vadd.f32 1e-05, %v370_v47 }
 0x167   :  { %v499_v50 = vpop.f32.mrf.mxu0  ;;  %398 = vperm.xlu1 %517, %v384_v48   ;;  %393 = vperm.xlu0 %518, %v383_v49  }
 0x168   :  { %v188_v55 = vadd.f32 1e-05, %v499_v50 }
 0x169   :  { %v171_v52 = vpop.f32.mrf.mxu0 }
 0x16a   :  { %v186_v53 = vadd.f32 1e-05, %v171_v52 }
 0x16b   :  { %v500_v54 = vpop.f32.mrf.mxu0  ;;  %403 = vperm.xlu1 %517, %v385_v51  }
 0x16c   :  { %192 = vperm.xlu0 %518, %v186_v53   ;;  %v189_v58 = vadd.f32 1e-05, %v500_v54 }
 0x16d   :  { %v174_v56 = vpop.f32.mrf.mxu0 }
 0x16e   :  { %v187_v57 = vadd.f32 1e-05, %v174_v56 }
 0x170   :  { %202 = vperm.xlu0 %518, %v188_v55   ;;  %197 = vperm.xlu1 %517, %v187_v57  }
 0x174   :  { %207 = vperm.xlu1 %517, %v189_v58  }
 0x1de   :  { %v389_v59 = vpop.permute.xlu1 %388 }
 0x1df   :  { %539 = vrcp.f32 %v389_v59 }
 0x1e2   :  { %v399_v60 = vpop.permute.xlu1 %398  ;;  %v394_v61 = vpop.permute.xlu0 %393 }
 0x1e3   :  { %541 = vrcp.f32 %v399_v60 }
 0x1e4   :  { %543 = vrcp.f32 %v394_v61 }
 0x1e6   :  { %v404_v62 = vpop.permute.xlu1 %403 }
 0x1e7   :  { %545 = vrcp.f32 %v404_v62  ;;  %v193_v63 = vpop.permute.xlu0 %192 }
 0x1e8   :  { %547 = vrcp.f32 %v193_v63 }
 0x1eb   :  { %v198_v0 = vpop.permute.xlu1 %197  ;;  %v203_v1 = vpop.permute.xlu0 %202 }
 0x1ec   :  { %v540_v2 = vpop.eup %539  ;;  %549 = vrcp.f32 %v198_v0 }
 0x1ed   :  { %551 = vrcp.f32 %v203_v1  ;;  %v407_v3 = vmul.f32 %v540_v2, %v367_v44 }
 0x1ef   :  { %v208_v4 = vpop.permute.xlu1 %207  ;;  %v418_v5 = vmin.f32 %v407_v3, 0.0  ;;  %vm414_vm2 = vcmp.gt.f32.partialorder %v407_v3, 0.0 }
 0x1f0   :  { %v542_v6 = vpop.eup %541  ;;  %553 = vrcp.f32 %v208_v4 }
 0x1f1   :  { %v544_v7 = vpop.eup %543  ;;  %v422_v8 = vmul.f32 1.442695, %v418_v5  ;;  %v411_v9 = vmul.f32 %v542_v6, %v507_v43 }
 0x1f2   :  { %v409_v10 = vmul.f32 %v544_v7, %v370_v47 }
 0x1f3   :  { %555 = vpow2.f32 %v422_v8  ;;  %v420_v11 = vmin.f32 %v411_v9, 0.0  ;;  %vm416_vm3 = vcmp.gt.f32.partialorder %v411_v9, 0.0 }
 0x1f4   :  { %v546_v12 = vpop.eup %545  ;;  %v419_v13 = vmin.f32 %v409_v10, 0.0  ;;  %vm415_vm4 = vcmp.gt.f32.partialorder %v409_v10, 0.0 }
 0x1f5   :  { %v548_v14 = vpop.eup %547  ;;  %v426_v15 = vmul.f32 1.442695, %v420_v11  ;;  %v413_v16 = vmul.f32 %v546_v12, %v508_v46 }
 0x1f6   :  { %v424_v17 = vmul.f32 1.442695, %v419_v13  ;;  %v211_v18 = vmul.f32 %v548_v14, %v171_v52 }
 0x1f7   :  { %557 = vpow2.f32 %v426_v15  ;;  %v421_v19 = vmin.f32 %v413_v16, 0.0  ;;  %vm417_vm5 = vcmp.gt.f32.partialorder %v413_v16, 0.0 }
 0x1f8   :  { %559 = vpow2.f32 %v424_v17  ;;  %v222_v20 = vmin.f32 %v211_v18, 0.0  ;;  %vm218_vm7 = vcmp.gt.f32.partialorder %v211_v18, 0.0 }
 0x1f9   :  { %v550_v21 = vpop.eup %549  ;;  %v428_v22 = vmul.f32 1.442695, %v421_v19 }
 0x1fa   :  { %v552_v23 = vpop.eup %551  ;;  %v226_v24 = vmul.f32 1.442695, %v222_v20  ;;  %v213_v25 = vmul.f32 %v550_v21, %v174_v56 }
 0x1fb   :  { %561 = vpow2.f32 %v428_v22  ;;  %v215_v26 = vmul.f32 %v552_v23, %v499_v50 }
 0x1fc   :  { %563 = vpow2.f32 %v226_v24  ;;  %v223_v27 = vmin.f32 %v213_v25, 0.0  ;;  %vm219_vm8 = vcmp.gt.f32.partialorder %v213_v25, 0.0 }
 0x1fd   :  { %v554_v28 = vpop.eup %553  ;;  %v224_v29 = vmin.f32 %v215_v26, 0.0  ;;  %vm220_vm9 = vcmp.gt.f32.partialorder %v215_v26, 0.0 }
 0x1fe   :  { %v228_v30 = vmul.f32 1.442695, %v223_v27  ;;  %v217_v31 = vmul.f32 %v554_v28, %v500_v54 }
 0x1ff   :  { %v230_v32 = vmul.f32 1.442695, %v224_v29 }
 0x200   :  { %v556_v33 = vpop.eup %555  ;;  %565 = vpow2.f32 %v228_v30  ;;  %v225_v34 = vmin.f32 %v217_v31, 0.0  ;;  %vm221_vm10 = vcmp.gt.f32.partialorder %v217_v31, 0.0 }
 0x201   :  { %v481_v35 = vadd.f32 -1.0, %v556_v33  ;;  %567 = vpow2.f32 %v230_v32 }
 0x202   :  { %v232_v36 = vmul.f32 1.442695, %v225_v34 }
 0x203   :  { %v434_v38 = vsel %vm414_vm2, %v407_v3, %v481_v35 }
 0x204   :  { %v558_v37 = vpop.eup %557  ;;  %442 = vrot.lane.b32.xlu0 %v434_v38, %s574_s1  ;;  %569 = vpow2.f32 %v232_v36 }
 0x205   :  { %v560_v39 = vpop.eup %559  ;;  %v483_v40 = vadd.f32 -1.0, %v558_v37 }
 0x206   :  { %v482_v41 = vadd.f32 -1.0, %v560_v39 }
 0x207   :  { %v436_v42 = vsel %vm416_vm3, %v411_v9, %v483_v40 }
 0x208   :  { %v562_v43 = vpop.eup %561  ;;  %446 = vrot.lane.b32.xlu0 %v436_v42, %s574_s1  ;;  %v435_v44 = vsel %vm415_vm4, %v409_v10, %v482_v41 }
 0x209   :  { %v564_v45 = vpop.eup %563  ;;  %444 = vrot.lane.b32.xlu1 %v435_v44, %s574_s1  ;;  %v484_v46 = vadd.f32 -1.0, %v562_v43 }
 0x20a   :  { %v468_v47 = vadd.f32 -1.0, %v564_v45 }
 0x20b   :  { %v437_v48 = vsel %vm417_vm5, %v413_v16, %v484_v46 }
 0x20c   :  { %v238_v49 = vsel %vm218_vm7, %v211_v18, %v468_v47 }
 0x20d   :  { %v566_v50 = vpop.eup %565  ;;  %448 = vrot.lane.b32.xlu1 %v437_v48, %s574_s1  ;;  %243 = vst.msk [vmem:[%s697_s4] sm:$0xff] %vm242_vm6, %v238_v49 }
 0x20e   :  { %v568_v51 = vpop.eup %567  ;;  %v469_v52 = vadd.f32 -1.0, %v566_v50 }
 0x20f   :  { %v470_v53 = vadd.f32 -1.0, %v568_v51 }
 0x210   :  { %v239_v54 = vsel %vm219_vm8, %v213_v25, %v469_v52 }
 0x211   :  { %v570_v55 = vpop.eup %569  ;;  %244 = vst.msk [vmem:[%s697_s4 + $0x8] sm:$0xff] %vm242_vm6, %v239_v54  ;;  %v240_v56 = vsel %vm220_vm9, %v215_v26, %v470_v53 }
 0x212   :  { %245 = vst.msk [vmem:[%s697_s4 + $0x10] sm:$0xff] %vm242_vm6, %v240_v56  ;;  %v471_v57 = vadd.f32 -1.0, %v570_v55 }
 0x214   :  { %v241_v58 = vsel %vm221_vm10, %v217_v31, %v471_v57 }
 0x215   :  { %246 = vst.msk [vmem:[%s697_s4 + $0x18] sm:$0xff] %vm242_vm6, %v241_v58 }
 0x276   :  { %v443_v59 = vpop.permute.xlu0 %442 }
 0x277   :  { %455 = vst.msk [vmem:[%s697_s4] sm:$0xff] %vm454_vm11, %v443_v59 }
 0x27a   :  { %v447_v60 = vpop.permute.xlu0 %446 }
 0x27b   :  { %v445_v61 = vpop.permute.xlu1 %444  ;;  %457 = vst.msk [vmem:[%s697_s4 + $0x10] sm:$0xff] %vm454_vm11, %v447_v60 }
 0x27c   :  { %456 = vst.msk [vmem:[%s697_s4 + $0x8] sm:$0xff] %vm454_vm11, %v445_v61 }
 0x27f   :  { %v449_v62 = vpop.permute.xlu1 %448 }
 0x280   :  { %458 = vst.msk [vmem:[%s697_s4 + $0x18] sm:$0xff] %vm454_vm11, %v449_v62 }

// kernel: spgat_forward.5
= control target key start
LH: loop header
LB: loop body
LE: loop exit
PB: predicated region body
PF: predicated region fallthrough
CT: control target
= control target key end

     0   :  { %v554_v0 = vmov 1   ;;  %v555_v1 = vmov 0   ;;  %s684_s0 = inlined_call_operand.vmem [shape: f32[32,2], index: 0, kind: input, shape index: {}]   ;;  %s685_s2 = inlined_call_operand.vmem [shape: bf16[2,32,5], index: 2, kind: input, shape index: {}]   ;;  %s686_s3 = inlined_call_operand.vmem [shape: s8[32,32], index: 3, kind: input, shape index: {}]   ;;  %s687_s1 = inlined_call_operand.vmem [shape: f32[2,32], index: 1, kind: input, shape index: {}]   ;;  %s688_s4 = inlined_call_operand.vmem [shape: f32[32,4], index: 4, kind: output, shape index: {}]  }
   0x1   :  { %496 = vset.pattern.permute.xlu1 %v554_v0  ;;  %495 = vset.pattern.permute.xlu0 %v555_v1  ;;  %v22_v2 = vld [vmem:[%s684_s0] sm:$0xff]  ;;  %v23_v3 = vld [vmem:[%s684_s0 + $0x8] sm:$0xff]  ;;  %v24_v4 = vld [vmem:[%s684_s0 + $0x10] sm:$0xff] }
   0x2   :  { %248 = vperm.xlu1 %496, %v22_v2   ;;  %29 = vperm.xlu0 %495, %v22_v2   ;;  %v25_v5 = vld [vmem:[%s684_s0 + $0x18] sm:$0xff]  ;;  %v502_v6 = vld [vmem:[%s685_s2 + $0x8] sm:$0xff]   ;;  %v503_v7 = vld [vmem:[%s685_s2] sm:$0xff]  }
   0x3   :  { %476 = vmatprep.subr.bf16.mxu0 %v502_v6  ;;  %v504_v8 = vld [vmem:[%s685_s2 + $0x18] sm:$0xff]   ;;  %v505_v9 = vld [vmem:[%s685_s2 + $0x10] sm:$0xff]   ;;  %v20_v10 = vld [vmem:[%s686_s3] sm:$0xff] }
   0x4   :  { %477 = vmatpush3.bf16.msra.mxu0 %v502_v6  ;;  %484 = vmatprep.subr.bf16.mxu1 %v504_v8  ;;  %vm21_vm0 = vnez %v20_v10  ;;  %v616_v24 = vld [vmem:[%s687_s1 + $0x1] ss:$0 sm:$0xff]  ;;  %v446_v25 = vld [vmem:[%s687_s1] ss:$0 sm:$0xff] }
   0x5   :  { %478 = vmatprep.subr.bf16.mxu0 %v503_v7  ;;  %485 = vmatpush3.bf16.msra.mxu1 %v504_v8  ;;  %v71_v11 = vsel %vm21_vm0, 16843009, %v555_v1 }
   0x6   :  { %252 = vperm.xlu1 %496, %v23_v3   ;;  %34 = vperm.xlu0 %495, %v23_v3   ;;  %v72_v12 = vunpack.c.0.s8 %v71_v11  ;;  %v73_v14 = vunpack.c.1.s8 %v71_v11  ;;  %v74_v15 = vunpack.c.2.s8 %v71_v11  ;;  %v75_v18 = vunpack.c.3.s8 %v71_v11 }
   0x7   :  { %486 = vmatprep.subr.bf16.mxu1 %v505_v9 }
   0x8   :  { %479 = vmatpush3.bf16.msra.mxu0 %v503_v7  ;;  %v76_v13 = vpack.c.b16 %v72_v12, %v72_v12  ;;  %v78_v17 = vpack.c.b16 %v73_v14, %v73_v14  ;;  %v80_v19 = vpack.c.b16 %v74_v15, %v74_v15  ;;  %v82_v21 = vpack.c.b16 %v75_v18, %v75_v18 }
   0x9   :  { %487 = vmatpush3.bf16.msra.mxu1 %v505_v9 }
   0xa   :  { %497 = vset.pattern.permute.xlu1 %v555_v1  ;;  %39 = vperm.xlu0 %495, %v24_v4   ;;  %v77_v16 = vpack.c.b8 %v76_v13, %v76_v13  ;;  %v79_v20 = vpack.c.b8 %v78_v17, %v78_v17  ;;  %v81_v23 = vpack.c.b8 %v80_v19, %v80_v19 }
   0xb   :  { %44 = vperm.xlu1 %497, %v25_v5   ;;  %v83_v26 = vpack.c.b8 %v82_v21, %v82_v21 }
   0xc   :  { %vm84_vm1 = vnez %v77_v16  ;;  %vm85_vm2 = vnez %v79_v20  ;;  %vm86_vm3 = vnez %v81_v23 }
   0xd   :  { %v88_v22 = vsel %vm84_vm1, 16843009, %v555_v1  ;;  %v89_v32 = vsel %vm85_vm2, 16843009, %v555_v1  ;;  %vm623_vm4 = vnez %v83_v26  ;;  %v90_v40 = vsel %vm86_vm3, 16843009, %v555_v1 }
   0xe   :  { %498 = vset.pattern.permute.xlu0 %v554_v0  ;;  %v92_v27 = vunpack.c.0.s8 %v88_v22  ;;  %v93_v37 = vunpack.c.0.s8 %v89_v32  ;;  %v91_v47 = vsel %vm623_vm4, 16843009, %v555_v1  ;;  %v94_v52 = vunpack.c.0.s8 %v90_v40 }
   0xf   :  { %499 = vset.pattern.permute.xlu1 %v554_v0  ;;  %256 = vperm.xlu0 %498, %v24_v4   ;;  %v95_v63 = vunpack.c.0.s8 %v91_v47  ;;  %vm130_vm1 = vcmask 261120   ;;  %vm437_vm4 = vcmask 31744  }
  0x10   :  { %260 = vperm.xlu1 %499, %v25_v5   ;;  %vm627_vm7 = vcmp.ne.s32.totalorder %v92_v27, 0  ;;  %vm97_vm10 = vcmp.ne.s32.totalorder %v93_v37, 0  ;;  %vm640_vm11 = vcmp.ne.s32.totalorder %v94_v52, 0 }
  0x11   :  { %vm645_vm14 = vcmp.ne.s32.totalorder %v95_v63, 0 }
  0x7d   :  { %v249_v28 = vpop.permute.xlu1 %248  ;;  %v30_v29 = vpop.permute.xlu0 %29 }
  0x7e   :  { %v267_v30 = vadd.f32 %v616_v24, %v249_v28  ;;  %v51_v31 = vadd.f32 %v446_v25, %v30_v29 }
  0x80   :  { %vm271_vm5 = vcmp.gt.f32.partialorder %v267_v30, 0.0  ;;  %v275_v34 = vmul.f32 0.2, %v267_v30  ;;  %vm55_vm6 = vcmp.gt.f32.partialorder %v51_v31, 0.0  ;;  %v59_v35 = vmul.f32 0.2, %v51_v31 }
  0x81   :  { %v253_v38 = vpop.permute.xlu1 %252  ;;  %v35_v39 = vpop.permute.xlu0 %34 }
  0x82   :  { %v279_v41 = vsel %vm271_vm5, %v267_v30, %v275_v34  ;;  %v63_v42 = vsel %vm55_vm6, %v51_v31, %v59_v35  ;;  %v268_v43 = vadd.f32 %v616_v24, %v253_v38  ;;  %v52_v44 = vadd.f32 %v446_v25, %v35_v39 }
  0x83   :  { %v283_v45 = vsub.f32 0.0, %v279_v41  ;;  %v67_v46 = vsub.f32 0.0, %v63_v42  ;;  %v556_v42 = vmov 4  }
  0x84   :  { %vm272_vm8 = vcmp.gt.f32.partialorder %v268_v43, 0.0  ;;  %v276_v48 = vmul.f32 0.2, %v268_v43  ;;  %vm56_vm9 = vcmp.gt.f32.partialorder %v52_v44, 0.0  ;;  %v60_v49 = vmul.f32 0.2, %v52_v44  ;;  %500 = vset.pattern.permute.xlu1 %v556_v42  ;;  %501 = vset.pattern.permute.xlu0 %v556_v42 }
  0x85   :  { %v287_v50 = vsel %vm627_vm7, %v283_v45, -1e+30  ;;  %v100_v51 = vsel %vm627_vm7, %v67_v46, -1e+30  ;;  %v40_v53 = vpop.permute.xlu0 %39 }
  0x86   :  { %v291_v54 = vmul.f32 1.442695, %v287_v50  ;;  %v104_v55 = vmul.f32 1.442695, %v100_v51  ;;  %v280_v56 = vsel %vm272_vm8, %v268_v43, %v276_v48  ;;  %v64_v57 = vsel %vm56_vm9, %v52_v44, %v60_v49  ;;  %v45_v58 = vpop.permute.xlu1 %44 }
  0x87   :  { %v284_v59 = vsub.f32 0.0, %v280_v56  ;;  %v68_v60 = vsub.f32 0.0, %v64_v57  ;;  %v53_v61 = vadd.f32 %v446_v25, %v40_v53  ;;  %v54_v62 = vadd.f32 %v446_v25, %v45_v58 }
  0x88   :  { %506 = vpow2.f32 %v291_v54 }
  0x89   :  { %v288_v0 = vsel %vm97_vm10, %v284_v59, -1e+30  ;;  %v101_v1 = vsel %vm97_vm10, %v68_v60, -1e+30  ;;  %vm57_vm12 = vcmp.gt.f32.partialorder %v53_v61, 0.0  ;;  %508 = vpow2.f32 %v104_v55 }
  0x8a   :  { %v293_v3 = vmul.f32 1.442695, %v288_v0  ;;  %v106_v4 = vmul.f32 1.442695, %v101_v1  ;;  %v61_v5 = vmul.f32 0.2, %v53_v61  ;;  %v257_v6 = vpop.permute.xlu0 %256 }
  0x8b   :  { %vm58_vm13 = vcmp.gt.f32.partialorder %v54_v62, 0.0  ;;  %v62_v7 = vmul.f32 0.2, %v54_v62  ;;  %v269_v8 = vadd.f32 %v616_v24, %v257_v6  ;;  %v261_v9 = vpop.permute.xlu1 %260 }
  0x8c   :  { %510 = vpow2.f32 %v293_v3  ;;  %v65_v10 = vsel %vm57_vm12, %v53_v61, %v61_v5  ;;  %v270_v12 = vadd.f32 %v616_v24, %v261_v9 }
  0x8d   :  { %512 = vpow2.f32 %v106_v4  ;;  %v69_v13 = vsub.f32 0.0, %v65_v10  ;;  %v66_v14 = vsel %vm58_vm13, %v54_v62, %v62_v7  ;;  %vm273_vm15 = vcmp.gt.f32.partialorder %v269_v8, 0.0 }
  0x8e   :  { %v70_v15 = vsub.f32 0.0, %v66_v14  ;;  %v277_v16 = vmul.f32 0.2, %v269_v8  ;;  %vm274_vm0 = vcmp.gt.f32.partialorder %v270_v12, 0.0  ;;  %v278_v17 = vmul.f32 0.2, %v270_v12 }
  0x8f   :  { %v102_v18 = vsel %vm640_vm11, %v69_v13, -1e+30 }
  0x90   :  { %v108_v19 = vmul.f32 1.442695, %v102_v18  ;;  %v103_v20 = vsel %vm645_vm14, %v70_v15, -1e+30  ;;  %v281_v21 = vsel %vm273_vm15, %v269_v8, %v277_v16  ;;  %v282_v22 = vsel %vm274_vm0, %v270_v12, %v278_v17 }
  0x91   :  { %v110_v23 = vmul.f32 1.442695, %v103_v20  ;;  %v285_v25 = vsub.f32 0.0, %v281_v21  ;;  %v286_v24 = vsub.f32 0.0, %v282_v22 }
  0x92   :  { %514 = vpow2.f32 %v108_v19 }
  0x93   :  { %516 = vpow2.f32 %v110_v23  ;;  %v289_v26 = vsel %vm640_vm11, %v285_v25, -1e+30  ;;  %v290_v27 = vsel %vm645_vm14, %v286_v24, -1e+30 }
  0x94   :  { %v295_v28 = vmul.f32 1.442695, %v289_v26  ;;  %v297_v29 = vmul.f32 1.442695, %v290_v27 }
  0x95   :  { %v507_v30 = vpop.eup %506 }
  0x96   :  { %518 = vpow2.f32 %v295_v28  ;;  %v509_v31 = vpop.eup %508 }
  0x97   :  { %520 = vpow2.f32 %v297_v29 }
  0x99   :  { %v511_v32 = vpop.eup %510 }
  0x9a   :  { %v513_v33 = vpop.eup %512  ;;  %v299_v34 = vpack.c.bf16 %v511_v32, %v507_v30 }
  0x9b   :  { %v112_v35 = vpack.c.bf16 %v513_v33, %v509_v31 }
  0x9c   :  { %488 = vmatprep.mubr.msk.bf16.mxu1 %vm130_vm1, %v299_v34 }
  0x9d   :  { %480 = vmatprep.mubr.msk.bf16.mxu0 %vm130_vm1, %v112_v35 }
  0x9f   :  { %v515_v36 = vpop.eup %514 }
  0xa0   :  { %v517_v37 = vpop.eup %516 }
  0xa1   :  { %v113_v38 = vpack.c.bf16 %v517_v37, %v515_v36 }
  0xa3   :  { %v519_v39 = vpop.eup %518  ;;  %481 = vmatmul.mubr.msk.bf16.vlgmr.msra.gmra.mxu0 %vm130_vm1, %v113_v38 }
  0xa4   :  { %v521_v40 = vpop.eup %520 }
  0xa5   :  { %v300_v41 = vpack.c.bf16 %v521_v40, %v519_v39 }
  0xa7   :  { %489 = vmatmul.mubr.msk.bf16.vlgmr.msra.gmra.mxu1 %vm130_vm1, %v300_v41 }
 0x163   :  { %v482_v43 = vpop.f32.mrf.mxu0 }
 0x164   :  { %v188_v44 = vadd.f32 1e-05, %v482_v43 }
 0x165   :  { %v171_v45 = vpop.f32.mrf.mxu0 }
 0x166   :  { %202 = vperm.xlu1 %500, %v188_v44   ;;  %v186_v48 = vadd.f32 1e-05, %v171_v45 }
 0x167   :  { %v483_v46 = vpop.f32.mrf.mxu0  ;;  %v490_v47 = vpop.f32.mrf.mxu1 }
 0x168   :  { %v189_v53 = vadd.f32 1e-05, %v483_v46  ;;  %v375_v57 = vadd.f32 1e-05, %v490_v47 }
 0x169   :  { %v358_v49 = vpop.f32.mrf.mxu1  ;;  %v174_v51 = vpop.f32.mrf.mxu0 }
 0x16a   :  { %192 = vperm.xlu1 %500, %v186_v48   ;;  %v373_v50 = vadd.f32 1e-05, %v358_v49  ;;  %v187_v55 = vadd.f32 1e-05, %v174_v51 }
 0x16b   :  { %v491_v52 = vpop.f32.mrf.mxu1 }
 0x16c   :  { %379 = vperm.xlu0 %501, %v373_v50   ;;  %v376_v58 = vadd.f32 1e-05, %v491_v52 }
 0x16d   :  { %v361_v54 = vpop.f32.mrf.mxu1 }
 0x16e   :  { %207 = vperm.xlu1 %500, %v189_v53   ;;  %v374_v56 = vadd.f32 1e-05, %v361_v54 }
 0x170   :  { %197 = vperm.xlu0 %501, %v187_v55  }
 0x172   :  { %384 = vperm.xlu1 %500, %v374_v56  }
 0x174   :  { %389 = vperm.xlu0 %501, %v375_v57  }
 0x176   :  { %394 = vperm.xlu1 %500, %v376_v58  }
 0x1e1   :  { %v203_v59 = vpop.permute.xlu1 %202 }
 0x1e2   :  { %522 = vrcp.f32 %v203_v59 }
 0x1e5   :  { %v193_v60 = vpop.permute.xlu1 %192 }
 0x1e6   :  { %524 = vrcp.f32 %v193_v60 }
 0x1e7   :  { %v380_v61 = vpop.permute.xlu0 %379 }
 0x1e8   :  { %526 = vrcp.f32 %v380_v61 }
 0x1e9   :  { %v208_v62 = vpop.permute.xlu1 %207 }
 0x1ea   :  { %528 = vrcp.f32 %v208_v62 }
 0x1eb   :  { %v198_v63 = vpop.permute.xlu0 %197 }
 0x1ec   :  { %530 = vrcp.f32 %v198_v63 }
 0x1ed   :  { %v385_v0 = vpop.permute.xlu1 %384 }
 0x1ee   :  { %532 = vrcp.f32 %v385_v0 }
 0x1ef   :  { %v390_v1 = vpop.permute.xlu0 %389  ;;  %v523_v2 = vpop.eup %522 }
 0x1f0   :  { %534 = vrcp.f32 %v390_v1  ;;  %v658_v5 = vmul.f32 %v523_v2, %v482_v43 }
 0x1f1   :  { %v395_v3 = vpop.permute.xlu1 %394 }
 0x1f2   :  { %536 = vrcp.f32 %v395_v3  ;;  %v224_v11 = vmin.f32 %v658_v5, 0.0  ;;  %vm220_vm7 = vcmp.gt.f32.partialorder %v658_v5, 0.0 }
 0x1f3   :  { %v525_v4 = vpop.eup %524 }
 0x1f4   :  { %v211_v6 = vmul.f32 %v525_v4, %v171_v45  ;;  %v230_v19 = vmul.f32 1.442695, %v224_v11 }
 0x1f5   :  { %v527_v7 = vpop.eup %526 }
 0x1f6   :  { %v222_v8 = vmin.f32 %v211_v6, 0.0  ;;  %v398_v9 = vmul.f32 %v527_v7, %v358_v49  ;;  %vm218_vm2 = vcmp.gt.f32.partialorder %v211_v6, 0.0 }
 0x1f7   :  { %v529_v10 = vpop.eup %528 }
 0x1f8   :  { %v226_v12 = vmul.f32 1.442695, %v222_v8  ;;  %v409_v13 = vmin.f32 %v398_v9, 0.0  ;;  %v661_v14 = vmul.f32 %v529_v10, %v483_v46  ;;  %vm405_vm3 = vcmp.gt.f32.partialorder %v398_v9, 0.0 }
 0x1f9   :  { %v531_v15 = vpop.eup %530 }
 0x1fa   :  { %538 = vpow2.f32 %v226_v12  ;;  %v413_v16 = vmul.f32 1.442695, %v409_v13  ;;  %v225_v17 = vmin.f32 %v661_v14, 0.0  ;;  %v213_v20 = vmul.f32 %v531_v15, %v174_v51 }
 0x1fb   :  { %v533_v18 = vpop.eup %532  ;;  %vm221_vm9 = vcmp.gt.f32.partialorder %v661_v14, 0.0 }
 0x1fc   :  { %540 = vpow2.f32 %v413_v16  ;;  %v232_v21 = vmul.f32 1.442695, %v225_v17  ;;  %v400_v22 = vmul.f32 %v533_v18, %v361_v54  ;;  %v223_v25 = vmin.f32 %v213_v20, 0.0 }
 0x1fd   :  { %v535_v23 = vpop.eup %534  ;;  %542 = vpow2.f32 %v230_v19  ;;  %vm219_vm5 = vcmp.gt.f32.partialorder %v213_v20, 0.0 }
 0x1fe   :  { %v410_v24 = vmin.f32 %v400_v22, 0.0  ;;  %v402_v26 = vmul.f32 %v535_v23, %v490_v47  ;;  %v228_v28 = vmul.f32 1.442695, %v223_v25  ;;  %544 = vpow2.f32 %v232_v21 }
 0x1ff   :  { %v537_v27 = vpop.eup %536  ;;  %vm406_vm6 = vcmp.gt.f32.partialorder %v400_v22, 0.0 }
 0x200   :  { %v415_v29 = vmul.f32 1.442695, %v410_v24  ;;  %v411_v30 = vmin.f32 %v402_v26, 0.0  ;;  %v404_v31 = vmul.f32 %v537_v27, %v491_v52  ;;  %546 = vpow2.f32 %v228_v28 }
 0x201   :  { %vm407_vm8 = vcmp.gt.f32.partialorder %v402_v26, 0.0 }
 0x202   :  { %548 = vpow2.f32 %v415_v29  ;;  %v417_v32 = vmul.f32 1.442695, %v411_v30  ;;  %v412_v33 = vmin.f32 %v404_v31, 0.0  ;;  %vm408_vm10 = vcmp.gt.f32.partialorder %v404_v31, 0.0 }
 0x204   :  { %550 = vpow2.f32 %v417_v32  ;;  %v419_v34 = vmul.f32 1.442695, %v412_v33 }
 0x206   :  { %552 = vpow2.f32 %v419_v34 }
 0x207   :  { %v539_v35 = vpop.eup %538 }
 0x208   :  { %v451_v36 = vadd.f32 -1.0, %v539_v35 }
 0x209   :  { %v541_v37 = vpop.eup %540 }
 0x20a   :  { %v464_v38 = vadd.f32 -1.0, %v541_v37  ;;  %v543_v39 = vpop.eup %542  ;;  %v238_v40 = vsel %vm218_vm2, %v211_v6, %v451_v36 }
 0x20b   :  { %v545_v42 = vpop.eup %544  ;;  %v453_v48 = vadd.f32 -1.0, %v543_v39 }
 0x20c   :  { %v425_v41 = vsel %vm405_vm3, %v398_v9, %v464_v38  ;;  %v454_v52 = vadd.f32 -1.0, %v545_v42 }
 0x20d   :  { %v429_v43 = vadd.f32 %v425_v41, %v238_v40  ;;  %v547_v44 = vpop.eup %546  ;;  %v240_v57 = vsel %vm220_vm7, %v658_v5, %v453_v48 }
 0x20e   :  { %v452_v47 = vadd.f32 -1.0, %v547_v44  ;;  %v241_v62 = vsel %vm221_vm9, %v661_v14, %v454_v52 }
 0x20f   :  { %v549_v45 = vpop.eup %548  ;;  %v433_v46 = vmul.f32 0.5, %v429_v43 }
 0x210   :  { %v465_v49 = vadd.f32 -1.0, %v549_v45  ;;  %v239_v51 = vsel %vm219_vm5, %v213_v20, %v452_v47 }
 0x211   :  { %v551_v50 = vpop.eup %550  ;;  %438 = vst.msk [vmem:[%s688_s4] sm:$0xff] %vm437_vm4, %v433_v46 }
 0x212   :  { %v426_v53 = vsel %vm406_vm6, %v400_v22, %v465_v49  ;;  %v466_v54 = vadd.f32 -1.0, %v551_v50 }
 0x213   :  { %v553_v55 = vpop.eup %552  ;;  %v430_v56 = vadd.f32 %v426_v53, %v239_v51 }
 0x214   :  { %v427_v58 = vsel %vm407_vm8, %v402_v26, %v466_v54  ;;  %v467_v59 = vadd.f32 -1.0, %v553_v55 }
 0x215   :  { %v434_v60 = vmul.f32 0.5, %v430_v56  ;;  %v431_v61 = vadd.f32 %v427_v58, %v240_v57 }
 0x216   :  { %v428_v63 = vsel %vm408_vm10, %v404_v31, %v467_v59 }
 0x217   :  { %439 = vst.msk [vmem:[%s688_s4 + $0x8] sm:$0xff] %vm437_vm4, %v434_v60  ;;  %v435_v0 = vmul.f32 0.5, %v431_v61  ;;  %v432_v1 = vadd.f32 %v428_v63, %v241_v62 }
 0x219   :  { %440 = vst.msk [vmem:[%s688_s4 + $0x10] sm:$0xff] %vm437_vm4, %v435_v0  ;;  %v436_v2 = vmul.f32 0.5, %v432_v1 }
 0x21b   :  { %441 = vst.msk [vmem:[%s688_s4 + $0x18] sm:$0xff] %vm437_vm4, %v436_v2 }

</bundles_post_ra>
